<compile_context>
chip_gen: v5e
topology: v5e:2x2
jax: 0.10.0
libtpu: 0.0.40
codegen_flags: <defaults>
</compile_context>

<pallas_src>
import functools

import jax
import jax.numpy as jnp
from jax.experimental import pallas as pl
from jax.experimental.pallas import tpu as pltpu


_GROUP = 8          # j-rows per inner-loop chunk (one sublane group)
_PAD_BIAS = 1.0e6   # bias for batch-padding rows of M -> exp(-dist) == 0


def _round_up(n, m):
    return ((n + m - 1) // m) * m


def _mbd_kernel(mi_ref, mj_ref, s_ref, o_ref, acc_ref, *, n_groups):
    """One (i, j) block pair of the minibatch-discrimination computation.

    mi_ref : (TB, F)  rows of M = x @ T owned by this output block (i axis)
    mj_ref : (TB, F)  rows of M being compared against (j accumulation axis)
    s_ref  : (F, O)   constant 0/1 block-diagonal kd-group selector
    o_ref  : (TB, O)  per-row feature sums (written at the last j step)
    acc_ref: (TB, O)  f32 running accumulator, resident across the j axis
    """
    j = pl.program_id(1)

    @pl.when(j == 0)
    def _init():
        acc_ref[...] = jnp.zeros_like(acc_ref)

    tb, f = mi_ref.shape
    m_i = mi_ref[...][:, None, :].astype(jnp.float32)       # (TB, 1, F), hoisted
    s = s_ref[...]                                           # (F, O), hoisted

    acc = jnp.zeros(acc_ref.shape, jnp.float32)
    # Chunked pairwise loop: never materializes (TB, TB, F); each (TB, 8, F)
    # chunk feeds the MXU selector matmul, exp and the group reduction before
    # the next chunk is produced.
    for g in range(n_groups):
        m_j = mj_ref[g * _GROUP:(g + 1) * _GROUP, :].astype(jnp.float32)  # (8, F)
        diff = jnp.abs(m_i - m_j[None, :, :])                 # (TB, 8, F)
        # kd-group reduction on the MXU (block-diagonal 0/1 selector).
        dist = jnp.dot(diff.reshape(tb * _GROUP, f), s,
                       preferred_element_type=jnp.float32)    # (TB*8, O)
        expn = jnp.exp(-dist)
        acc = acc + expn.reshape(tb, _GROUP, -1).sum(axis=1)  # (TB, O)
    acc_ref[...] += acc

    @pl.when(j == pl.num_programs(1) - 1)
    def _finalize():
        o_ref[...] = acc_ref[...]


def minibatch_discrimination(x, T, *, block=None):
    """JAX/Pallas equivalent of MinibatchDiscrimination.forward.

    x: (B, in_features)
    T: (in_features, out_features, kernel_dims)
    returns: (B, in_features + out_features)
    """
    B, in_features = x.shape
    in_f, out_features, kernel_dims = T.shape
    assert in_f == in_features
    F = out_features * kernel_dims

    # --- Hoisted prologue: M = x @ T (same row-major flatten as torch .view).
    t2d = T.reshape(in_features, F)
    m = jnp.dot(x, t2d)                                       # (B, F)

    # --- Generation-aware tile sizing.
    try:
        vmem_cap = pltpu.get_tpu_info().vmem_capacity_bytes
    except Exception:  # pragma: no cover - conservative fallback
        vmem_cap = 64 * 1024 * 1024
    small_vmem = vmem_cap < 100 * 1024 * 1024                 # v7x: 64 MiB / TC
    if block is None:
        target = 256 if small_vmem else 512
        budget = (6 if small_vmem else 12) * 1024 * 1024
        # Dominant per-row live bytes: double-buffered M blocks (i and j),
        # the (8, F) diff chunk + matmul staging, lane-padded dist/exp tiles.
        per_row = 4 * (4 * F + 2 * _GROUP * F + 2 * _GROUP * 128 + 4 * 128)
        tb = min(target, max(8, (budget // per_row) // 8 * 8))
        # Keep >=2 blocks on the "parallel" i axis (both TCs busy on v7x).
        if _round_up(B, 8) >= 16:
            tb = min(tb, _round_up((B + 1) // 2, 8))
    else:
        tb = max(8, (block // 8) * 8)
    tb = min(tb, _round_up(B, 8))
    b_pad = _round_up(B, tb)
    nb = b_pad // tb
    n_groups = tb // _GROUP

    # Bias padded rows with a large constant so their exp(-dist) contribution
    # underflows to exactly 0 -> no masking inside the kernel.
    if b_pad != B:
        m = jnp.pad(m, ((0, b_pad - B), (0, 0)), constant_values=_PAD_BIAS)

    # 0/1 block-diagonal kd-group selector: S[o*kd + k, o] = 1.
    s = (jnp.arange(F)[:, None] // kernel_dims
         == jnp.arange(out_features)[None, :]).astype(jnp.float32)

    kernel = functools.partial(_mbd_kernel, n_groups=n_groups)

    feat = pl.pallas_call(
        kernel,
        out_shape=jax.ShapeDtypeStruct((b_pad, out_features), jnp.float32),
        grid_spec=pltpu.PrefetchScalarGridSpec(
            num_scalar_prefetch=0,
            grid=(nb, nb),
            in_specs=[
                pl.BlockSpec((tb, F), lambda i, j: (i, 0)),            # M rows i
                pl.BlockSpec((tb, F), lambda i, j: (j, 0)),            # M rows j
                pl.BlockSpec((F, out_features), lambda i, j: (0, 0)),  # selector
            ],
            out_specs=pl.BlockSpec((tb, out_features), lambda i, j: (i, 0)),
            scratch_shapes=[pltpu.VMEM((tb, out_features), jnp.float32)],
        ),
        compiler_params=pltpu.CompilerParams(
            dimension_semantics=("parallel", "arbitrary"),
            vmem_limit_bytes=32 * 1024 * 1024,
        ),
    )(m, m, s)

    feat = feat[:B] - 1.0
    return jnp.concatenate([x, feat.astype(x.dtype)], axis=1)


def _reference(x, T):
    """Pure-JAX reference matching the PyTorch semantics exactly."""
    B, in_f = x.shape
    out_f, kd = T.shape[1], T.shape[2]
    M = (x @ T.reshape(in_f, out_f * kd)).reshape(B, out_f, kd)
    out = jnp.exp(-jnp.abs(M[None] - M[:, None]).sum(3)).sum(0) - 1.0
    return jnp.concatenate([x, out.astype(x.dtype)], axis=1)


if __name__ == "__main__":
    # Module config (synthetic, deterministic init).
    batch = 8
    in_features = 32
    out_features = 16
    kernel_dims = 8

    key = jax.random.PRNGKey(0)
    kx, kt, kx2, kx3 = jax.random.split(key, 4)
    x = jax.random.normal(kx, (batch, in_features), dtype=jnp.float32)
    # nn.Parameter(torch.randn(in, out, kd)) -> standard normal init.
    T = jax.random.normal(
        kt, (in_features, out_features, kernel_dims), dtype=jnp.float32)

    out = jax.block_until_ready(minibatch_discrimination(x, T))
    ref = _reference(x, T)
    assert out.shape == (batch, in_features + out_features), out.shape
    assert jnp.allclose(out, ref, atol=1e-4, rtol=1e-4), (
        float(jnp.max(jnp.abs(out - ref))))

    # Non-divisible batch + forced small block: multi-block grid, accumulation
    # across j blocks, and padded-row underflow path.
    x2 = jax.random.normal(kx2, (20, in_features), dtype=jnp.float32)
    out2 = jax.block_until_ready(minibatch_discrimination(x2, T, block=8))
    ref2 = _reference(x2, T)
    assert out2.shape == (20, in_features + out_features), out2.shape
    assert jnp.allclose(out2, ref2, atol=1e-4, rtol=1e-4), (
        float(jnp.max(jnp.abs(out2 - ref2))))

    # Auto tiling path: >=2 parallel i-blocks, multi-chunk inner loop, padding.
    x3 = jax.random.normal(kx3, (60, in_features), dtype=jnp.float32)
    out3 = jax.block_until_ready(minibatch_discrimination(x3, T))
    ref3 = _reference(x3, T)
    assert out3.shape == (60, in_features + out_features), out3.shape
    assert jnp.allclose(out3, ref3, atol=1e-4, rtol=1e-4), (
        float(jnp.max(jnp.abs(out3 - ref3))))

    print("KERNEL_OK")
</pallas_src>

<mosaic_0001>
module attributes {stable_mosaic.version = 11 : i64} {
  func.func @_mbd_kernel(%arg0: i32, %arg1: i32, %arg2: memref<8x128xf32, #tpu.memory_space<vmem>>, %arg3: memref<8x128xf32, #tpu.memory_space<vmem>>, %arg4: memref<128x16xf32, #tpu.memory_space<vmem>>, %arg5: memref<8x16xf32, #tpu.memory_space<vmem>>, %arg6: memref<8x16xf32, #tpu.memory_space<vmem>>) attributes {dimension_semantics = [#tpu.dimension_semantics<parallel>, #tpu.dimension_semantics<arbitrary>], iteration_bounds = array<i64: 1, 1>, scalar_prefetch = 0 : i64, scratch_operands = 1 : i64, tpu.core_type = #tpu.core_type<tc>, window_params = [{transform_indices = @transform_0, window_bounds = array<i64: 8, 128>}, {transform_indices = @transform_1, window_bounds = array<i64: 8, 128>}, {pipeline_mode = #tpu.pipeline_mode<synchronous>, transform_indices = @transform_2, window_bounds = array<i64: 128, 16>}, {transform_indices = @transform_3, window_bounds = array<i64: 8, 16>}]} {
    %c0_i32 = arith.constant 0 : i32
    %0 = arith.cmpi eq, %arg1, %c0_i32 : i32
    %1 = arith.extui %0 : i1 to i32
    %c0_i32_0 = arith.constant 0 : i32
    %2 = arith.cmpi ne, %1, %c0_i32_0 : i32
    scf.if %2 {
      %cst_15 = arith.constant 0.000000e+00 : f32
      %27 = vector.broadcast %cst_15 : f32 to vector<8x16xf32>
      %c0_16 = arith.constant 0 : index
      %c0_17 = arith.constant 0 : index
      %28 = vector.load %arg6[%c0_16, %c0_17] : memref<8x16xf32, #tpu.memory_space<vmem>>, vector<8x16xf32>
      tpu.vector_store %arg6[%c0_16, %c0_17], %27 {strides = array<i32>} : memref<8x16xf32, #tpu.memory_space<vmem>>, vector<8x16xf32>,
    } else {
    }
    %c0 = arith.constant 0 : index
    %c0_1 = arith.constant 0 : index
    %3 = vector.load %arg2[%c0, %c0_1] : memref<8x128xf32, #tpu.memory_space<vmem>>, vector<8x128xf32>
    %4 = vector.shape_cast %3 : vector<8x128xf32> to vector<8x1x128xf32>
    %c0_2 = arith.constant 0 : index
    %c0_3 = arith.constant 0 : index
    %5 = vector.load %arg4[%c0_2, %c0_3] : memref<128x16xf32, #tpu.memory_space<vmem>>, vector<128x16xf32>
    %cst = arith.constant 0.000000e+00 : f32
    %6 = vector.broadcast %cst : f32 to vector<8x16xf32>
    %c0_4 = arith.constant 0 : index
    %c0_5 = arith.constant 0 : index
    %7 = vector.load %arg3[%c0_4, %c0_5] : memref<8x128xf32, #tpu.memory_space<vmem>>, vector<8x128xf32>
    %8 = vector.shape_cast %7 : vector<8x128xf32> to vector<1x8x128xf32>
    %9 = vector.broadcast %4 : vector<8x1x128xf32> to vector<8x8x128xf32>
    %10 = vector.broadcast %8 : vector<1x8x128xf32> to vector<8x8x128xf32>
    %11 = arith.subf %9, %10 : vector<8x8x128xf32>
    %12 = math.absf %11 : vector<8x8x128xf32>
    %13 = vector.shape_cast %12 : vector<8x8x128xf32> to vector<64x128xf32>
    %cst_6 = arith.constant dense<0.000000e+00> : vector<64x16xf32>
    %14 = tpu.matmul %13, %5, %cst_6 {dimension_numbers = #tpu.dot_dimension_numbers<[1], [0], [0], [1], [0, 0, 1, 1], [], []>} : vector<64x128xf32>, vector<128x16xf32>, vector<64x16xf32> -> vector<64x16xf32>
    %cst_7 = arith.constant 0.000000e+00 : f32
    %15 = vector.broadcast %cst_7 : f32 to vector<64x16xf32>
    %16 = arith.subf %15, %14 : vector<64x16xf32>
    %17 = math.exp %16 : vector<64x16xf32>
    %18 = vector.shape_cast %17 : vector<64x16xf32> to vector<8x8x16xf32>
    %cst_8 = arith.constant dense<0.000000e+00> : vector<8x16xf32>
    %19 = vector.multi_reduction <add>, %18, %cst_8 [1] : vector<8x8x16xf32> to vector<8x16xf32>
    %20 = arith.addf %6, %19 : vector<8x16xf32>
    %c0_9 = arith.constant 0 : index
    %c0_10 = arith.constant 0 : index
    %21 = vector.load %arg6[%c0_9, %c0_10] : memref<8x16xf32, #tpu.memory_space<vmem>>, vector<8x16xf32>
    %22 = arith.addf %21, %20 : vector<8x16xf32>
    %c0_11 = arith.constant 0 : index
    %c0_12 = arith.constant 0 : index
    %23 = vector.load %arg6[%c0_11, %c0_12] : memref<8x16xf32, #tpu.memory_space<vmem>>, vector<8x16xf32>
    tpu.vector_store %arg6[%c0_11, %c0_12], %22 {strides = array<i32>} : memref<8x16xf32, #tpu.memory_space<vmem>>, vector<8x16xf32>,
    %c0_i32_13 = arith.constant 0 : i32
    %24 = arith.cmpi eq, %arg1, %c0_i32_13 : i32
    %25 = arith.extui %24 : i1 to i32
    %c0_i32_14 = arith.constant 0 : i32
    %26 = arith.cmpi ne, %25, %c0_i32_14 : i32
    scf.if %26 {
      %c0_15 = arith.constant 0 : index
      %c0_16 = arith.constant 0 : index
      %27 = vector.load %arg6[%c0_15, %c0_16] : memref<8x16xf32, #tpu.memory_space<vmem>>, vector<8x16xf32>
      %c0_17 = arith.constant 0 : index
      %c0_18 = arith.constant 0 : index
      %28 = vector.load %arg5[%c0_17, %c0_18] : memref<8x16xf32, #tpu.memory_space<vmem>>, vector<8x16xf32>
      tpu.vector_store %arg5[%c0_17, %c0_18], %27 {strides = array<i32>} : memref<8x16xf32, #tpu.memory_space<vmem>>, vector<8x16xf32>,
    } else {
    }
    return
  }
  func.func @transform_0(%arg0: i32, %arg1: i32) -> (i32, i32) {
    %c0_i32 = arith.constant 0 : i32
    %c0_i32_0 = arith.constant 0 : i32
    return %arg0, %c0_i32 : i32, i32
  }
  func.func @transform_1(%arg0: i32, %arg1: i32) -> (i32, i32) {
    %c0_i32 = arith.constant 0 : i32
    %c0_i32_0 = arith.constant 0 : i32
    return %arg1, %c0_i32 : i32, i32
  }
  func.func @transform_2(%arg0: i32, %arg1: i32) -> (i32, i32) {
    %c0_i32 = arith.constant 0 : i32
    %c0_i32_0 = arith.constant 0 : i32
    %c0_i32_1 = arith.constant 0 : i32
    return %c0_i32, %c0_i32_0 : i32, i32
  }
  func.func @transform_3(%arg0: i32, %arg1: i32) -> (i32, i32) {
    %c0_i32 = arith.constant 0 : i32
    %c0_i32_0 = arith.constant 0 : i32
    return %arg0, %c0_i32 : i32, i32
  }
}

</mosaic_0001>

<bundles_post_ra>
// kernel: tpu_custom_call.1
= control target key start
LH: loop header
LB: loop body
LE: loop exit
PB: predicated region body
PF: predicated region fallthrough
CT: control target
= control target key end

     0   :  { %s448_s0 = inlined_call_operand.vmem [shape: f32[8,128], index: 0, kind: input, shape index: {}]   ;;  %s449_s1 = inlined_call_operand.vmem [shape: f32[8,128], index: 1, kind: input, shape index: {}]   ;;  %s450_s2 = inlined_call_operand.vmem [shape: f32[128,16], index: 2, kind: input, shape index: {}]   ;;  %s451_s3 = inlined_call_operand.hbm [shape: f32[8,16], index: 3, kind: output, shape index: {}]  }
   0x1   :  { %v45_v0 = vld [vmem:[%s450_s2 + $0x78] sm:$0xff]  ;;  %v44_v1 = vld [vmem:[%s450_s2 + $0x70] sm:$0xff]  ;;  %v43_v2 = vld [vmem:[%s450_s2 + $0x68] sm:$0xff] }
   0x2   :  { %79 = vmatpush.msra.mxu0 %v45_v0  ;;  %256 = vmatpush.msra.mxu1 %v45_v0  ;;  %v42_v3 = vld [vmem:[%s450_s2 + $0x60] sm:$0xff]  ;;  %v41_v4 = vld [vmem:[%s450_s2 + $0x58] sm:$0xff] }
   0x3   :  { %257 = vmatpush.msra.mxu2 %v45_v0  ;;  %258 = vmatpush.msra.mxu3 %v45_v0 }
   0x4   :  { %80 = vmatpush.msra.mxu0 %v44_v1  ;;  %259 = vmatpush.msra.mxu1 %v44_v1 }
   0x5   :  { %260 = vmatpush.msra.mxu2 %v44_v1  ;;  %261 = vmatpush.msra.mxu3 %v44_v1 }
   0x6   :  { %81 = vmatpush.msra.mxu0 %v43_v2  ;;  %262 = vmatpush.msra.mxu1 %v43_v2 }
   0x7   :  { %263 = vmatpush.msra.mxu2 %v43_v2  ;;  %264 = vmatpush.msra.mxu3 %v43_v2 }
   0x8   :  { %8 = vsyncpa [#allocation4], 0  ;;  %82 = vmatpush.msra.mxu0 %v42_v3  ;;  %265 = vmatpush.msra.mxu1 %v42_v3  ;;  %v40_v5 = vld [vmem:[%s450_s2 + $0x50] sm:$0xff]  ;;  %v39_v6 = vld [vmem:[%s450_s2 + $0x48] sm:$0xff]  ;;  %vm19_vm0 = vcmask 130048   ;;  %v348_v55 = vmov 0.0  }
   0x9   :  { %266 = vmatpush.msra.mxu2 %v42_v3  ;;  %267 = vmatpush.msra.mxu3 %v42_v3  ;;  %v38_v7 = vld [vmem:[%s450_s2 + $0x40] sm:$0xff]  ;;  %v37_v8 = vld [vmem:[%s450_s2 + $0x38] sm:$0xff]  ;;  %v36_v10 = vld [vmem:[%s450_s2 + $0x30] sm:$0xff]  ;;  %20 = vst.msk [vmem:[#allocation2] sm:$0xff] %vm19_vm0, %v348_v55  ;;  %vm218_vm1 = vcmask 1041409   ;;  %vm220_vm2 = vcmask 1042434  }
   0xa   :  { %83 = vmatpush.msra.mxu0 %v41_v4  ;;  %268 = vmatpush.msra.mxu1 %v41_v4  ;;  %v400_v9 = vld [vmem:[%s448_s0] sm:$0xff]  ;;  %v35_v12 = vld [vmem:[%s450_s2 + $0x28] sm:$0xff]  ;;  %v33_v18 = vld [vmem:[%s450_s2 + $0x18] sm:$0xff]  ;;  %vm222_vm3 = vcmask 1043459   ;;  %vm224_vm4 = vcmask 1044484   ;;  %vm226_vm5 = vcmask 1045509  }
   0xb   :  { %269 = vmatpush.msra.mxu2 %v41_v4  ;;  %270 = vmatpush.msra.mxu3 %v41_v4  ;;  %v24_v11 = vrot.slane %v400_v9, 2  ;;  %v26_v13 = vrot.slane %v400_v9, 4  ;;  %v28_v14 = vrot.slane %v400_v9, 6  ;;  %v34_v15 = vld [vmem:[%s450_s2 + $0x20] sm:$0xff]  ;;  %v47_v16 = vperm.slane %v400_v9, 0  ;;  %v32_v22 = vld [vmem:[%s450_s2 + $0x10] sm:$0xff] }
   0xc   :  { %84 = vmatpush.msra.mxu0 %v40_v5  ;;  %271 = vmatpush.msra.mxu1 %v40_v5  ;;  %v46_v19 = vld [vmem:[%s449_s1] sm:$0xff]  ;;  %v23_v25 = vrot.slane %v400_v9, 1  ;;  %v25_v26 = vrot.slane %v400_v9, 3  ;;  %v31_v27 = vld [vmem:[%s450_s2 + $0x8] sm:$0xff]  ;;  %v27_v30 = vrot.slane %v400_v9, 5  ;;  %v29_v31 = vrot.slane %v400_v9, 7 }
   0xd   :  { %272 = vmatpush.msra.mxu2 %v40_v5  ;;  %273 = vmatpush.msra.mxu3 %v40_v5  ;;  %v49_v17 = vperm.slane %v24_v11, 0  ;;  %v51_v20 = vperm.slane %v26_v13, 0  ;;  %v53_v21 = vperm.slane %v28_v14, 0  ;;  %v63_v23 = vsub.f32 %v47_v16, %v46_v19  ;;  %v30_v32 = vld [vmem:[%s450_s2] sm:$0xff]  ;;  %s349_s2 = smov [#allocation3]   ;;  %s247_s22 = sshll.u32 %s451_s3, 4  ;;  %s248_s22 = int_to_ptr.hbm [resolvable:$true] %s247_s22 }
   0xe   :  { %85 = vmatpush.msra.mxu0 %v39_v6  ;;  %274 = vmatpush.msra.mxu1 %v39_v6  ;;  %v48_v35 = vperm.slane %v23_v25, 0  ;;  %v50_v36 = vperm.slane %v25_v26, 0  ;;  %v52_v39 = vperm.slane %v27_v30, 0  ;;  %v54_v40 = vperm.slane %v29_v31, 0  ;;  %s245_s19 = sshll.u32 %s349_s2, 4  ;;  %s246_s19 = int_to_ptr.vmem [resolvable:$true] %s245_s19 }
   0xf   :  { %275 = vmatpush.msra.mxu2 %v39_v6  ;;  %276 = vmatpush.msra.mxu3 %v39_v6  ;;  %v65_v24 = vsub.f32 %v49_v17, %v46_v19  ;;  %v67_v28 = vsub.f32 %v51_v20, %v46_v19  ;;  %v69_v29 = vsub.f32 %v53_v21, %v46_v19  ;;  %v71_v33 = vand.u32 2147483647, %v63_v23 }
  0x10   :  { %86 = vmatpush.msra.mxu0 %v38_v7  ;;  %277 = vmatpush.msra.mxu1 %v38_v7  ;;  %v64_v41 = vsub.f32 %v48_v35, %v46_v19  ;;  %v66_v42 = vsub.f32 %v50_v36, %v46_v19  ;;  %v68_v43 = vsub.f32 %v52_v39, %v46_v19  ;;  %vm228_vm6 = vcmask 1046534  }
  0x11   :  { %278 = vmatpush.msra.mxu2 %v38_v7  ;;  %279 = vmatpush.msra.mxu3 %v38_v7  ;;  %v73_v34 = vand.u32 2147483647, %v65_v24  ;;  %v75_v37 = vand.u32 2147483647, %v67_v28  ;;  %v77_v38 = vand.u32 2147483647, %v69_v29  ;;  %v70_v44 = vsub.f32 %v54_v40, %v46_v19 }
  0x12   :  { %87 = vmatpush.msra.mxu0 %v37_v8  ;;  %280 = vmatpush.msra.mxu1 %v37_v8  ;;  %v72_v45 = vand.u32 2147483647, %v64_v41  ;;  %v74_v46 = vand.u32 2147483647, %v66_v42  ;;  %v76_v47 = vand.u32 2147483647, %v68_v43 }
  0x13   :  { %281 = vmatpush.msra.mxu2 %v37_v8  ;;  %282 = vmatpush.msra.mxu3 %v37_v8  ;;  %v78_v48 = vand.u32 2147483647, %v70_v44  ;;  %vm230_vm7 = vcmask 1047559  }
  0x14   :  { %88 = vmatpush.msra.mxu0 %v36_v10  ;;  %283 = vmatpush.msra.mxu1 %v36_v10 }
  0x15   :  { %284 = vmatpush.msra.mxu2 %v36_v10  ;;  %285 = vmatpush.msra.mxu3 %v36_v10 }
  0x16   :  { %89 = vmatpush.msra.mxu0 %v35_v12  ;;  %286 = vmatpush.msra.mxu1 %v35_v12 }
  0x17   :  { %287 = vmatpush.msra.mxu2 %v35_v12  ;;  %288 = vmatpush.msra.mxu3 %v35_v12 }
  0x18   :  { %90 = vmatpush.msra.mxu0 %v34_v15  ;;  %289 = vmatpush.msra.mxu1 %v34_v15 }
  0x19   :  { %290 = vmatpush.msra.mxu2 %v34_v15  ;;  %291 = vmatpush.msra.mxu3 %v34_v15 }
  0x1a   :  { %91 = vmatpush.msra.mxu0 %v33_v18  ;;  %292 = vmatpush.msra.mxu1 %v33_v18 }
  0x1b   :  { %293 = vmatpush.msra.mxu2 %v33_v18  ;;  %294 = vmatpush.msra.mxu3 %v33_v18 }
  0x1c   :  { %92 = vmatpush.msra.mxu0 %v32_v22  ;;  %295 = vmatpush.msra.mxu1 %v32_v22 }
  0x1d   :  { %296 = vmatpush.msra.mxu2 %v32_v22  ;;  %297 = vmatpush.msra.mxu3 %v32_v22 }
  0x1e   :  { %93 = vmatpush.msra.mxu0 %v31_v27  ;;  %298 = vmatpush.msra.mxu1 %v31_v27 }
  0x1f   :  { %299 = vmatpush.msra.mxu2 %v31_v27  ;;  %300 = vmatpush.msra.mxu3 %v31_v27 }
  0x20   :  { %94 = vmatpush.msra.mxu0 %v30_v32  ;;  %301 = vmatpush.msra.mxu1 %v30_v32 }
  0x21   :  { %302 = vmatpush.msra.mxu2 %v30_v32  ;;  %303 = vmatpush.msra.mxu3 %v30_v32 }
  0x22   :  { %95 = vmatmul.f32.vlgmr.msra.gmra.mxu0 %v71_v33  ;;  %101 = vmatmul.f32.vlgmr.msra.gmra.mxu1 %v73_v34 }
  0x23   :  { %107 = vmatmul.f32.vlgmr.msra.gmra.mxu2 %v75_v37  ;;  %113 = vmatmul.f32.vlgmr.msra.gmra.mxu3 %v77_v38 }
  0x2a   :  { %98 = vmatmul.f32.gmra.mxu0 %v72_v45  ;;  %104 = vmatmul.f32.gmra.mxu1 %v74_v46 }
  0x2b   :  { %110 = vmatmul.f32.gmra.mxu2 %v76_v47  ;;  %116 = vmatmul.f32.gmra.mxu3 %v78_v48 }
  0x9f   :  { %v96_v49 = vpop.f32.mrf.mxu0  ;;  %v102_v50 = vpop.f32.mrf.mxu1 }
  0xa0   :  { %v120_v51 = vsub.f32 0.0, %v96_v49  ;;  %v122_v52 = vsub.f32 0.0, %v102_v50 }
  0xa2   :  { %v128_v53 = vmul.f32 1.442695, %v120_v51  ;;  %v132_v54 = vmul.f32 1.442695, %v122_v52 }
  0xa4   :  { %306 = vpow2.f32 %v128_v53 }
  0xa5   :  { %308 = vpow2.f32 %v132_v54 }
  0xa6   :  { %v108_v56 = vpop.f32.mrf.mxu2  ;;  %v114_v57 = vpop.f32.mrf.mxu3 }
  0xa7   :  { %v124_v58 = vsub.f32 0.0, %v108_v56  ;;  %v126_v59 = vsub.f32 0.0, %v114_v57  ;;  %v99_v60 = vpop.f32.mrf.mxu0  ;;  %v105_v61 = vpop.f32.mrf.mxu1 }
  0xa8   :  { %v121_v62 = vsub.f32 0.0, %v99_v60  ;;  %v123_v63 = vsub.f32 0.0, %v105_v61 }
  0xa9   :  { %v136_v0 = vmul.f32 1.442695, %v124_v58  ;;  %v140_v1 = vmul.f32 1.442695, %v126_v59 }
  0xaa   :  { %v307_v2 = vpop.eup %306  ;;  %v130_v3 = vmul.f32 1.442695, %v121_v62  ;;  %v134_v4 = vmul.f32 1.442695, %v123_v63 }
  0xab   :  { %v309_v5 = vpop.eup %308  ;;  %v145_v6 = vsel %vm19_vm0, %v307_v2, 0.0  ;;  %310 = vpow2.f32 %v136_v0 }
  0xac   :  { %v146_v7 = vrot.slane %v145_v6, 4  ;;  %v159_v8 = vsel %vm19_vm0, %v309_v5, 0.0  ;;  %312 = vpow2.f32 %v140_v1 }
  0xad   :  { %v160_v9 = vrot.slane %v159_v8, 4  ;;  %314 = vpow2.f32 %v130_v3 }
  0xae   :  { %316 = vpow2.f32 %v134_v4  ;;  %v111_v10 = vpop.f32.mrf.mxu2  ;;  %v117_v11 = vpop.f32.mrf.mxu3  ;;  %v147_v12 = vadd.f32 %v146_v7, %v145_v6 }
  0xaf   :  { %v125_v13 = vsub.f32 0.0, %v111_v10  ;;  %v127_v14 = vsub.f32 0.0, %v117_v11  ;;  %v161_v15 = vadd.f32 %v160_v9, %v159_v8 }
  0xb0   :  { %v148_v22 = vrot.slane %v147_v12, 2 }
  0xb1   :  { %v311_v16 = vpop.eup %310  ;;  %v138_v17 = vmul.f32 1.442695, %v125_v13  ;;  %v142_v18 = vmul.f32 1.442695, %v127_v14  ;;  %v162_v26 = vrot.slane %v161_v15, 2 }
  0xb2   :  { %v313_v19 = vpop.eup %312  ;;  %v173_v20 = vsel %vm19_vm0, %v311_v16, 0.0  ;;  %v149_v34 = vadd.f32 %v148_v22, %v147_v12 }
  0xb3   :  { %v315_v21 = vpop.eup %314  ;;  %v174_v23 = vrot.slane %v173_v20, 4  ;;  %v187_v24 = vsel %vm19_vm0, %v313_v19, 0.0  ;;  %318 = vpow2.f32 %v138_v17  ;;  %v163_v36 = vadd.f32 %v162_v26, %v161_v15  ;;  %v209_v15 = vld [vmem:[#allocation2] sm:$0xff] }
  0xb4   :  { %v317_v25 = vpop.eup %316  ;;  %v188_v27 = vrot.slane %v187_v24, 4  ;;  %v152_v28 = vsel %vm19_vm0, %v315_v21, 0.0  ;;  %320 = vpow2.f32 %v142_v18  ;;  %v150_v45 = vrot.slane %v149_v34, 1 }
  0xb5   :  { %v175_v29 = vadd.f32 %v174_v23, %v173_v20  ;;  %v153_v30 = vrot.slane %v152_v28, 4  ;;  %v166_v31 = vsel %vm19_vm0, %v317_v25, 0.0  ;;  %v164_v49 = vrot.slane %v163_v36, 1 }
  0xb6   :  { %v189_v32 = vadd.f32 %v188_v27, %v187_v24  ;;  %v167_v33 = vrot.slane %v166_v31, 4  ;;  %v151_v58 = vadd.f32 %v150_v45, %v149_v34 }
  0xb7   :  { %v154_v35 = vadd.f32 %v153_v30, %v152_v28  ;;  %v176_v37 = vrot.slane %v175_v29, 2  ;;  %v165_v61 = vadd.f32 %v164_v49, %v163_v36 }
  0xb8   :  { %v168_v38 = vadd.f32 %v167_v33, %v166_v31  ;;  %v190_v42 = vrot.slane %v189_v32, 2 }
  0xb9   :  { %v319_v39 = vpop.eup %318  ;;  %v155_v40 = vrot.slane %v154_v35, 2  ;;  %v177_v50 = vadd.f32 %v176_v37, %v175_v29 }
  0xba   :  { %v321_v41 = vpop.eup %320  ;;  %v169_v43 = vrot.slane %v168_v38, 2  ;;  %v180_v44 = vsel %vm19_vm0, %v319_v39, 0.0  ;;  %v191_v55 = vadd.f32 %v190_v42, %v189_v32 }
  0xbb   :  { %v156_v46 = vadd.f32 %v155_v40, %v154_v35  ;;  %v181_v47 = vrot.slane %v180_v44, 4  ;;  %v194_v48 = vsel %vm19_vm0, %v321_v41, 0.0  ;;  %v178_v62 = vrot.slane %v177_v50, 1 }
  0xbc   :  { %v170_v51 = vadd.f32 %v169_v43, %v168_v38  ;;  %v195_v52 = vrot.slane %v194_v48, 4  ;;  %v192_v3 = vrot.slane %v191_v55, 1 }
  0xbd   :  { %v157_v53 = vrot.slane %v156_v46, 1  ;;  %v182_v54 = vadd.f32 %v181_v47, %v180_v44  ;;  %v179_v8 = vadd.f32 %v178_v62, %v177_v50 }
  0xbe   :  { %v171_v56 = vrot.slane %v170_v51, 1  ;;  %v196_v57 = vadd.f32 %v195_v52, %v194_v48  ;;  %v193_v11 = vadd.f32 %v192_v3, %v191_v55 }
  0xbf   :  { %v158_v59 = vadd.f32 %v157_v53, %v156_v46  ;;  %v183_v60 = vrot.slane %v182_v54, 2 }
  0xc0   :  { %v197_v63 = vrot.slane %v196_v57, 2  ;;  %v172_v1 = vadd.f32 %v171_v56, %v170_v51 }
  0xc1   :  { %v219_v0 = vsel %vm218_vm1, %v158_v59, %v151_v58  ;;  %v184_v2 = vadd.f32 %v183_v60, %v182_v54 }
  0xc2   :  { %v221_v4 = vsel %vm220_vm2, %v165_v61, %v219_v0  ;;  %v198_v5 = vadd.f32 %v197_v63, %v196_v57 }
  0xc3   :  { %v223_v6 = vsel %vm222_vm3, %v172_v1, %v221_v4  ;;  %v185_v7 = vrot.slane %v184_v2, 1 }
  0xc4   :  { %v199_v9 = vrot.slane %v198_v5, 1  ;;  %v225_v12 = vsel %vm224_vm4, %v179_v8, %v223_v6 }
  0xc5   :  { %v186_v10 = vadd.f32 %v185_v7, %v184_v2 }
  0xc6   :  { %v200_v14 = vadd.f32 %v199_v9, %v198_v5 }
  0xc7   :  { %v227_v13 = vsel %vm226_vm5, %v186_v10, %v225_v12 }
  0xc8   :  { %v229_v16 = vsel %vm228_vm6, %v193_v11, %v227_v13 }
  0xc9   :  { %v231_v17 = vsel %vm230_vm7, %v200_v14, %v229_v16 }
  0xca   :  { %v233_v18 = vadd.f32 %v231_v17, %v209_v15 }
  0xcc   :  { %234 = vst.msk [vmem:[#allocation2] sm:$0xff] %vm19_vm0, %v233_v18 }
  0xd3   :  { %v238_v19 = vld [vmem:[#allocation2] sm:$0xff] }
  0xd4   :  { %239 = vst.msk [vmem:[#allocation3] sm:$0xff] %vm19_vm0, %v238_v19 }
  0xd5   :  { %250 = dma.vmem_to_hbm [thread:$0]  %s246_s19, 128, %s248_s22, [#allocation4]  }
  0xd6   :  { %346 = dma.done.wait [#allocation4], 128  }
  0xd7   :  { %347 = vsyncadd [#allocation4], 4294967168 }
  0xd8   :  { %255 = vsyncpa [#allocation4], 1 }

</bundles_post_ra>
